<compile_context>
chip_gen: v6e
topology: v6e:2x2x1
jax: 0.10.0
libtpu: 0.0.40
codegen_flags: <defaults>
</compile_context>

<pallas_src>
import functools

import jax
import jax.numpy as jnp
from jax.experimental import pallas as pl
from jax.experimental.pallas import tpu as pltpu

HIDDEN = 1000


def _round_up(n, m):
    return (n + m - 1) // m * m


def net_kernel(x_ref, w1_ref, b1_ref, w2_ref, b2_ref, o_ref, *, out_valid):
    # fc1: bf16 operands on the MXU, f32 accumulation, then bias + ReLU in f32.
    h = jnp.dot(x_ref[...], w1_ref[...], preferred_element_type=jnp.float32)
    h = jnp.maximum(h + b1_ref[...], 0.0)

    # fc2 + bias + ReLU (bf16 operands, f32 accumulate).
    z = jnp.dot(h.astype(jnp.bfloat16), w2_ref[...],
                preferred_element_type=jnp.float32)
    z = jnp.maximum(z + b2_ref[...], 0.0)

    # Mask padded output columns to -inf so they drop out of max/sum.
    col = jax.lax.broadcasted_iota(jnp.int32, z.shape, dimension=1)
    z = jnp.where(col < out_valid, z, -jnp.inf)

    # Numerically stable softmax over dim=1; reciprocal rides the EUP slot.
    m = jnp.max(z, axis=1, keepdims=True)
    e = jnp.exp(z - m)
    s = jnp.sum(e, axis=1, keepdims=True)
    o_ref[...] = (e * pl.reciprocal(s, approx=True)).astype(o_ref.dtype)


def net_forward(x, w1, b1, w2, b2):
    """x: any shape whose trailing dims flatten to shape1 = input_num*6.

    Weights are stored transposed vs. torch.nn.Linear, i.e. (in, out), so the
    kernel computes y = x @ W + b directly on the MXU.
    """
    shape1, H = w1.shape
    O = w2.shape[1]

    x_flat = x.reshape(-1, shape1)            # == torch .view(-1, shape1)
    B = x_flat.shape[0]

    # Lane/MXU-aligned padded dims.
    K_pad = _round_up(shape1, 128)            # 192  -> 256
    H_pad = _round_up(H, 128)                 # 1000 -> 1024
    O_pad = _round_up(O, 128)                 # 10   -> 128

    # Batch tiling: small batches get one minimal tile, large batches get
    # TB=256 tiles so the x DMA pipelines against the fc1 matmul.
    TB = min(256, _round_up(B, 8))
    B_pad = _round_up(B, TB)

    # Zero-pad operands (numerically exact, see header comment).
    x_p = jnp.zeros((B_pad, K_pad), jnp.bfloat16).at[:B, :shape1].set(
        x_flat.astype(jnp.bfloat16))
    w1_p = jnp.zeros((K_pad, H_pad), jnp.bfloat16).at[:shape1, :H].set(
        w1.astype(jnp.bfloat16))
    b1_p = jnp.zeros((1, H_pad), jnp.float32).at[:, :H].set(
        b1.reshape(1, H).astype(jnp.float32))
    w2_p = jnp.zeros((H_pad, O_pad), jnp.bfloat16).at[:H, :O].set(
        w2.astype(jnp.bfloat16))
    b2_p = jnp.zeros((1, O_pad), jnp.float32).at[:, :O].set(
        b2.reshape(1, O).astype(jnp.float32))

    kernel = functools.partial(net_kernel, out_valid=O)

    out = pl.pallas_call(
        kernel,
        out_shape=jax.ShapeDtypeStruct((B_pad, O_pad), jnp.float32),
        grid_spec=pltpu.PrefetchScalarGridSpec(
            num_scalar_prefetch=0,
            grid=(B_pad // TB,),
            in_specs=[
                pl.BlockSpec((TB, K_pad), lambda i: (i, 0)),   # x tile
                pl.BlockSpec((K_pad, H_pad), lambda i: (0, 0)),  # w1 resident
                pl.BlockSpec((1, H_pad), lambda i: (0, 0)),      # b1 resident
                pl.BlockSpec((H_pad, O_pad), lambda i: (0, 0)),  # w2 resident
                pl.BlockSpec((1, O_pad), lambda i: (0, 0)),      # b2 resident
            ],
            out_specs=pl.BlockSpec((TB, O_pad), lambda i: (i, 0)),
        ),
        compiler_params=pltpu.CompilerParams(
            dimension_semantics=("parallel",),
            vmem_limit_bytes=16 << 20,
        ),
    )(x_p, w1_p, b1_p, w2_p, b2_p)

    return out[:B, :O]


def init_params(key, input_num, output_num):
    """Deterministic init mimicking nn.Linear (uniform +-1/sqrt(fan_in)).
    Weights stored as (in_features, out_features)."""
    shape1 = input_num * 6
    hidden = HIDDEN
    k1, k2, k3, k4 = jax.random.split(key, 4)
    bound1 = 1.0 / jnp.sqrt(shape1)
    bound2 = 1.0 / jnp.sqrt(hidden)
    w1 = jax.random.uniform(k1, (shape1, hidden), jnp.float32, -bound1, bound1)
    b1 = jax.random.uniform(k2, (hidden,), jnp.float32, -bound1, bound1)
    w2 = jax.random.uniform(k3, (hidden, output_num), jnp.float32, -bound2, bound2)
    b2 = jax.random.uniform(k4, (output_num,), jnp.float32, -bound2, bound2)
    return w1, b1, w2, b2


if __name__ == "__main__":
    input_num = 32
    output_num = 10
    batch = 2

    key = jax.random.PRNGKey(0)
    kx, kp = jax.random.split(key)

    # Input laid out as (batch, 6, input_num); forward flattens to (batch, 192).
    x = jax.random.normal(kx, (batch, 6, input_num), jnp.float32)
    w1, b1, w2, b2 = init_params(kp, input_num, output_num)

    out = net_forward(x, w1, b1, w2, b2)
    out = jax.block_until_ready(out)

    # Pure-JAX f32 reference check (kernel matmuls run in bf16 -> loose tol).
    x_flat = x.reshape(-1, input_num * 6)
    h = jnp.maximum(x_flat @ w1 + b1, 0.0)
    z = jnp.maximum(h @ w2 + b2, 0.0)
    ref = jax.nn.softmax(z, axis=1)

    assert out.shape == (batch, output_num)
    assert jnp.allclose(jnp.sum(out, axis=1), 1.0, atol=1e-3)
    assert jnp.allclose(out, ref, atol=2e-2, rtol=2e-2)

    print("KERNEL_OK")
</pallas_src>

<mosaic_0001>
module attributes {stable_mosaic.version = 11 : i64} {
  func.func @net_kernel(%arg0: i32, %arg1: memref<8x256xbf16, #tpu.memory_space<vmem>>, %arg2: memref<256x1024xbf16, #tpu.memory_space<vmem>>, %arg3: memref<1x1024xf32, #tpu.memory_space<vmem>>, %arg4: memref<1024x128xbf16, #tpu.memory_space<vmem>>, %arg5: memref<1x128xf32, #tpu.memory_space<vmem>>, %arg6: memref<8x128xf32, #tpu.memory_space<vmem>>) attributes {dimension_semantics = [#tpu.dimension_semantics<parallel>], iteration_bounds = array<i64: 1>, scalar_prefetch = 0 : i64, scratch_operands = 0 : i64, tpu.core_type = #tpu.core_type<tc>, window_params = [{transform_indices = @transform_0, window_bounds = array<i64: 8, 256>}, {pipeline_mode = #tpu.pipeline_mode<synchronous>, transform_indices = @transform_1, window_bounds = array<i64: 256, 1024>}, {pipeline_mode = #tpu.pipeline_mode<synchronous>, transform_indices = @transform_2, window_bounds = array<i64: 1, 1024>}, {pipeline_mode = #tpu.pipeline_mode<synchronous>, transform_indices = @transform_3, window_bounds = array<i64: 1024, 128>}, {pipeline_mode = #tpu.pipeline_mode<synchronous>, transform_indices = @transform_4, window_bounds = array<i64: 1, 128>}, {transform_indices = @transform_5, window_bounds = array<i64: 8, 128>}]} {
    %c0 = arith.constant 0 : index
    %c0_0 = arith.constant 0 : index
    %0 = vector.load %arg1[%c0, %c0_0] : memref<8x256xbf16, #tpu.memory_space<vmem>>, vector<8x256xbf16>
    %c0_1 = arith.constant 0 : index
    %c0_2 = arith.constant 0 : index
    %1 = vector.load %arg2[%c0_1, %c0_2] : memref<256x1024xbf16, #tpu.memory_space<vmem>>, vector<256x1024xbf16>
    %cst = arith.constant dense<0.000000e+00> : vector<8x1024xf32>
    %2 = tpu.matmul %0, %1, %cst {dimension_numbers = #tpu.dot_dimension_numbers<[1], [0], [0], [1], [0, 0, 1, 1], [], []>} : vector<8x256xbf16>, vector<256x1024xbf16>, vector<8x1024xf32> -> vector<8x1024xf32>
    %c0_3 = arith.constant 0 : index
    %c0_4 = arith.constant 0 : index
    %3 = vector.load %arg3[%c0_3, %c0_4] : memref<1x1024xf32, #tpu.memory_space<vmem>>, vector<1x1024xf32>
    %4 = vector.broadcast %3 : vector<1x1024xf32> to vector<8x1024xf32>
    %5 = arith.addf %2, %4 : vector<8x1024xf32>
    %cst_5 = arith.constant 0.000000e+00 : f32
    %6 = vector.broadcast %cst_5 : f32 to vector<8x1024xf32>
    %7 = arith.maximumf %5, %6 : vector<8x1024xf32>
    %8 = arith.truncf %7 : vector<8x1024xf32> to vector<8x1024xbf16>
    %c0_6 = arith.constant 0 : index
    %c0_7 = arith.constant 0 : index
    %9 = vector.load %arg4[%c0_6, %c0_7] : memref<1024x128xbf16, #tpu.memory_space<vmem>>, vector<1024x128xbf16>
    %cst_8 = arith.constant dense<0.000000e+00> : vector<8x128xf32>
    %10 = tpu.matmul %8, %9, %cst_8 {dimension_numbers = #tpu.dot_dimension_numbers<[1], [0], [0], [1], [0, 0, 1, 1], [], []>} : vector<8x1024xbf16>, vector<1024x128xbf16>, vector<8x128xf32> -> vector<8x128xf32>
    %c0_9 = arith.constant 0 : index
    %c0_10 = arith.constant 0 : index
    %11 = vector.load %arg5[%c0_9, %c0_10] : memref<1x128xf32, #tpu.memory_space<vmem>>, vector<1x128xf32>
    %12 = vector.broadcast %11 : vector<1x128xf32> to vector<8x128xf32>
    %13 = arith.addf %10, %12 : vector<8x128xf32>
    %cst_11 = arith.constant 0.000000e+00 : f32
    %14 = vector.broadcast %cst_11 : f32 to vector<8x128xf32>
    %15 = arith.maximumf %13, %14 : vector<8x128xf32>
    %16 = tpu.iota {dimensions = array<i32: 1>} : vector<8x128xi32>
    %c10_i32 = arith.constant 10 : i32
    %17 = vector.broadcast %c10_i32 : i32 to vector<8x128xi32>
    %18 = arith.cmpi slt, %16, %17 : vector<8x128xi32>
    %cst_12 = arith.constant 0xFF800000 : f32
    %19 = vector.broadcast %cst_12 : f32 to vector<8x128xf32>
    %20 = arith.select %18, %15, %19 : vector<8x128xi1>, vector<8x128xf32>
    %cst_13 = arith.constant dense<0xFF800000> : vector<8xf32>
    %21 = vector.multi_reduction <maximumf>, %20, %cst_13 [1] : vector<8x128xf32> to vector<8xf32>
    %22 = vector.shape_cast %21 : vector<8xf32> to vector<8x1xf32>
    %23 = vector.broadcast %22 : vector<8x1xf32> to vector<8x128xf32>
    %24 = arith.subf %20, %23 : vector<8x128xf32>
    %25 = math.exp %24 : vector<8x128xf32>
    %cst_14 = arith.constant dense<0.000000e+00> : vector<8xf32>
    %26 = vector.multi_reduction <add>, %25, %cst_14 [1] : vector<8x128xf32> to vector<8xf32>
    %27 = vector.shape_cast %26 : vector<8xf32> to vector<8x1xf32>
    %28 = tpu.reciprocal %27 {approx = true} : vector<8x1xf32> -> vector<8x1xf32>
    %29 = vector.broadcast %28 : vector<8x1xf32> to vector<8x128xf32>
    %30 = arith.mulf %25, %29 : vector<8x128xf32>
    %c0_15 = arith.constant 0 : index
    %c0_16 = arith.constant 0 : index
    %31 = vector.load %arg6[%c0_15, %c0_16] : memref<8x128xf32, #tpu.memory_space<vmem>>, vector<8x128xf32>
    tpu.vector_store %arg6[%c0_15, %c0_16], %30 {strides = array<i32>} : memref<8x128xf32, #tpu.memory_space<vmem>>, vector<8x128xf32>,
    return
  }
  func.func @transform_0(%arg0: i32) -> (i32, i32) {
    %c0_i32 = arith.constant 0 : i32
    %c0_i32_0 = arith.constant 0 : i32
    return %arg0, %c0_i32 : i32, i32
  }
  func.func @transform_1(%arg0: i32) -> (i32, i32) {
    %c0_i32 = arith.constant 0 : i32
    %c0_i32_0 = arith.constant 0 : i32
    %c0_i32_1 = arith.constant 0 : i32
    return %c0_i32, %c0_i32_0 : i32, i32
  }
  func.func @transform_2(%arg0: i32) -> (i32, i32) {
    %c0_i32 = arith.constant 0 : i32
    %c0_i32_0 = arith.constant 0 : i32
    %c0_i32_1 = arith.constant 0 : i32
    return %c0_i32, %c0_i32_0 : i32, i32
  }
  func.func @transform_3(%arg0: i32) -> (i32, i32) {
    %c0_i32 = arith.constant 0 : i32
    %c0_i32_0 = arith.constant 0 : i32
    %c0_i32_1 = arith.constant 0 : i32
    return %c0_i32, %c0_i32_0 : i32, i32
  }
  func.func @transform_4(%arg0: i32) -> (i32, i32) {
    %c0_i32 = arith.constant 0 : i32
    %c0_i32_0 = arith.constant 0 : i32
    %c0_i32_1 = arith.constant 0 : i32
    return %c0_i32, %c0_i32_0 : i32, i32
  }
  func.func @transform_5(%arg0: i32) -> (i32, i32) {
    %c0_i32 = arith.constant 0 : i32
    %c0_i32_0 = arith.constant 0 : i32
    return %arg0, %c0_i32 : i32, i32
  }
}

</mosaic_0001>

<bundles_post_ra>
// kernel: tpu_custom_call.1
= control target key start
LH: loop header
LB: loop body
LE: loop exit
PB: predicated region body
PF: predicated region fallthrough
CT: control target
= control target key end

     0   :  { %10 = vsyncpa [#allocation3], 0  ;;  %s2349_s0 = inlined_call_operand.hbm [shape: bf16[8,256], index: 0, kind: input, shape index: {}]   ;;  %s2350_s1 = inlined_call_operand.hbm [shape: bf16[256,1024], index: 1, kind: input, shape index: {}]   ;;  %s2351_s2 = inlined_call_operand.hbm [shape: f32[1,1024], index: 2, kind: input, shape index: {}]   ;;  %s2352_s3 = inlined_call_operand.hbm [shape: bf16[1024,128], index: 3, kind: input, shape index: {}]   ;;  %s2353_s4 = inlined_call_operand.vmem [shape: f32[1,128], index: 4, kind: input, shape index: {}]   ;;  %s2354_s5 = inlined_call_operand.hbm [shape: f32[8,128], index: 5, kind: output, shape index: {}]  }
   0x1   :  { %11 = vsyncpa [#allocation6], 0 }
   0x2   :  { %12 = vsyncpa [#allocation9], 0 }
   0x3   :  { %13 = vsyncpa [#allocation4], 0  ;;  %s2252_s18 = smov [#allocation5]  }
   0x4   :  { %s29_s19 = sshll.u32 %s2252_s18, 4  ;;  %s30_s19 = int_to_ptr.vmem [resolvable:$true] %s29_s19 }
   0x5   :  { %s2152_s20 = scalar_lea.vmem %s30_s19, 16384  ;;  %p2157_p1 = scmp.lt.s32.totalorder %s30_s19, %s30_s19 }
   0x6   :  { %p2153_p0 = scmp.ne.s32.totalorder %s30_s19, %s2152_s20  ;;  %p2158_p2 = scmp.lt.s32.totalorder %s2152_s20, %s2152_s20 }
   0x8   :  { %p2159_p3 = por %p2158_p2, %p2157_p1 }
   0xa   :  { %p2160_p4 = pnand %p2159_p3, %p2153_p0 }
   0xc   :  { %2163 = shalt.err (!%p2160_p4)
}
   0xd   :  { %s2253_s21 = smov 512   ;;  %s2254_s22 = smov 32  }
   0xe   :  { %35 = dma.hbm_to_vmem [thread:$0]  %s2350_s1, 16384, %s30_s19, [#allocation6], %s2253_s21, %s2253_s21, %s2254_s22  }
   0xf   :  { %s2255_s25 = smov [#allocation2]   ;;  %s2256_s27 = smov [#allocation7]  }
  0x10   :  { %s20_s26 = sshll.u32 %s2255_s25, 4  ;;  %s42_s28 = sshll.u32 %s2256_s27, 4  ;;  %s21_s26 = int_to_ptr.vmem [resolvable:$true] %s20_s26  ;;  %s43_s28 = int_to_ptr.vmem [resolvable:$true] %s42_s28 }
  0x11   :  { %s2172_s29 = scalar_lea.vmem %s21_s26, 128  ;;  %p2177_p6 = scmp.lt.s32.totalorder %s21_s26, %s21_s26 }
  0x12   :  { %p2173_p5 = scmp.ne.s32.totalorder %s21_s26, %s2172_s29  ;;  %p2178_p7 = scmp.lt.s32.totalorder %s2172_s29, %s2172_s29 }
  0x14   :  { %p2179_p8 = por %p2178_p7, %p2177_p6 }
  0x16   :  { %p2180_p9 = pnand %p2179_p8, %p2173_p5 }
  0x18   :  { %2183 = shalt.err (!%p2180_p9)
}
  0x19   :  { %23 = dma.hbm_to_vmem [thread:$0]  %s2349_s0, 128, %s21_s26, [#allocation3]  }
  0x1a   :  { %s2192_s7 = scalar_lea.vmem %s43_s28, 128  ;;  %p2197_p11 = scmp.lt.s32.totalorder %s43_s28, %s43_s28 }
  0x1b   :  { %p2193_p10 = scmp.ne.s32.totalorder %s43_s28, %s2192_s7  ;;  %p2198_p12 = scmp.lt.s32.totalorder %s2192_s7, %s2192_s7 }
  0x1d   :  { %p2199_p13 = por %p2198_p12, %p2197_p11 }
  0x1f   :  { %p2200_p0 = pnand %p2199_p13, %p2193_p10 }
  0x21   :  { %2203 = shalt.err (!%p2200_p0)
}
  0x22   :  { %45 = dma.hbm_to_vmem [thread:$0]  %s2351_s2, 128, %s43_s28, [#allocation6]  }
  0x23   :  { %s2257_s9 = smov [#allocation8]  }
  0x24   :  { %s51_s10 = sshll.u32 %s2257_s9, 4  ;;  %s52_s10 = int_to_ptr.vmem [resolvable:$true] %s51_s10 }
  0x25   :  { %s2212_s11 = scalar_lea.vmem %s52_s10, 8192  ;;  %p2217_p2 = scmp.lt.s32.totalorder %s52_s10, %s52_s10 }
  0x26   :  { %p2213_p1 = scmp.ne.s32.totalorder %s52_s10, %s2212_s11  ;;  %p2218_p3 = scmp.lt.s32.totalorder %s2212_s11, %s2212_s11 }
  0x28   :  { %p2219_p4 = por %p2218_p3, %p2217_p2 }
  0x2a   :  { %p2220_p5 = pnand %p2219_p4, %p2213_p1 }
  0x2c   :  { %2223 = shalt.err (!%p2220_p5)
}
  0x2d   :  { %s2258_s0 = smov 64   ;;  %s2259_s12 = smov 4  }
  0x2e   :  { %57 = dma.hbm_to_vmem [thread:$0]  %s2352_s3, 8192, %s52_s10, [#allocation9], %s2258_s0, %s2258_s0, %s2259_s12  }
  0x2f   :  { %2244 = dma.done.wait [#allocation3], 128  }
  0x30   :  { %2245 = vsyncadd [#allocation3], 4294967168 }
  0x31   :  { %2246 = dma.done.wait [#allocation6], 16512  }
  0x32   :  { %2247 = vsyncadd [#allocation6], 4294950784 }
  0x33   :  { %2248 = dma.done.wait [#allocation9], 8192  }
  0x34   :  { %2249 = vsyncadd [#allocation9], 4294959104  ;;  %v130_v0 = vld [vmem:[#allocation5 + $0x1c0] sm:$0xff]  ;;  %v131_v2 = vld [vmem:[#allocation5 + $0x1c8] sm:$0xff] }
  0x35   :  { %v134_v1 = vld [vmem:[#allocation5 + $0x1e0] sm:$0xff]  ;;  %v135_v4 = vld [vmem:[#allocation5 + $0x1e8] sm:$0xff]  ;;  %v2303_v53 = vld [vmem:[#allocation2] sm:$0xff] }
  0x36   :  { %v1841_v3 = vcombine.high %v130_v0, %v134_v1  ;;  %v1840_v5 = vcombine.low %v130_v0, %v134_v1  ;;  %v122_v6 = vld [vmem:[#allocation5 + $0x180] sm:$0xff]  ;;  %v1843_v8 = vcombine.high %v131_v2, %v135_v4  ;;  %v1842_v9 = vcombine.low %v131_v2, %v135_v4  ;;  %v123_v11 = vld [vmem:[#allocation5 + $0x188] sm:$0xff] }
  0x37   :  { %v126_v7 = vld [vmem:[#allocation5 + $0x1a0] sm:$0xff]  ;;  %v127_v12 = vld [vmem:[#allocation5 + $0x1a8] sm:$0xff]  ;;  %v2307_v57 = vcombine.high %v2303_v53, %v2303_v53 }
  0x38   :  { %v1833_v10 = vcombine.high %v122_v6, %v126_v7  ;;  %v114_v13 = vld [vmem:[#allocation5 + $0x140] sm:$0xff]  ;;  %891 = vmatprep.subr.bf16.mxu0 %v1841_v3  ;;  %v1835_v14 = vcombine.high %v123_v11, %v127_v12  ;;  %v115_v16 = vld [vmem:[#allocation5 + $0x148] sm:$0xff]  ;;  %932 = vmatprep.subr.bf16.mxu1 %v1843_v8  ;;  %v1832_v18 = vcombine.low %v122_v6, %v126_v7 }
  0x39   :  { %v118_v15 = vld [vmem:[#allocation5 + $0x160] sm:$0xff]  ;;  %v119_v17 = vld [vmem:[#allocation5 + $0x168] sm:$0xff]  ;;  %892 = vmatpush1.bf16.msra.mxu0 %v1840_v5  ;;  %933 = vmatpush1.bf16.msra.mxu1 %v1842_v9  ;;  %v1834_v19 = vcombine.low %v123_v11, %v127_v12 }
  0x3a   :  { %893 = vmatprep.subr.bf16.mxu0 %v1833_v10  ;;  %v1825_v20 = vcombine.high %v114_v13, %v118_v15  ;;  %934 = vmatprep.subr.bf16.mxu1 %v1835_v14  ;;  %v1827_v21 = vcombine.high %v115_v16, %v119_v17  ;;  %v106_v22 = vld [vmem:[#allocation5 + $0x100] sm:$0xff]  ;;  %v107_v24 = vld [vmem:[#allocation5 + $0x108] sm:$0xff]  ;;  %v1824_v26 = vcombine.low %v114_v13, %v118_v15 }
  0x3b   :  { %v110_v23 = vld [vmem:[#allocation5 + $0x120] sm:$0xff]  ;;  %v111_v25 = vld [vmem:[#allocation5 + $0x128] sm:$0xff]  ;;  %v1826_v27 = vcombine.low %v115_v16, %v119_v17  ;;  %923 = vmatprep.mubr.bf16.mxu0 %v2307_v57  ;;  %964 = vmatprep.mubr.bf16.mxu1 %v2307_v57 }
  0x3c   :  { %v1817_v28 = vcombine.high %v106_v22, %v110_v23  ;;  %v1819_v29 = vcombine.high %v107_v24, %v111_v25  ;;  %v98_v30 = vld [vmem:[#allocation5 + $0xc0] sm:$0xff]  ;;  %v99_v32 = vld [vmem:[#allocation5 + $0xc8] sm:$0xff]  ;;  %v1816_v34 = vcombine.low %v106_v22, %v110_v23  ;;  %v1818_v35 = vcombine.low %v107_v24, %v111_v25 }
  0x3d   :  { %894 = vmatpush1.bf16.msra.mxu0 %v1832_v18  ;;  %935 = vmatpush1.bf16.msra.mxu1 %v1834_v19  ;;  %v102_v31 = vld [vmem:[#allocation5 + $0xe0] sm:$0xff]  ;;  %v103_v33 = vld [vmem:[#allocation5 + $0xe8] sm:$0xff] }
  0x3e   :  { %895 = vmatprep.subr.bf16.mxu0 %v1825_v20  ;;  %936 = vmatprep.subr.bf16.mxu1 %v1827_v21  ;;  %v1809_v36 = vcombine.high %v98_v30, %v102_v31  ;;  %v1811_v37 = vcombine.high %v99_v32, %v103_v33  ;;  %v90_v38 = vld [vmem:[#allocation5 + $0x80] sm:$0xff]  ;;  %v91_v40 = vld [vmem:[#allocation5 + $0x88] sm:$0xff]  ;;  %v1808_v42 = vcombine.low %v98_v30, %v102_v31 }
  0x3f   :  { %v94_v39 = vld [vmem:[#allocation5 + $0xa0] sm:$0xff]  ;;  %v95_v41 = vld [vmem:[#allocation5 + $0xa8] sm:$0xff]  ;;  %v1810_v43 = vcombine.low %v99_v32, %v103_v33 }
  0x40   :  { %v1801_v44 = vcombine.high %v90_v38, %v94_v39  ;;  %v1803_v45 = vcombine.high %v91_v40, %v95_v41  ;;  %v82_v46 = vld [vmem:[#allocation5 + $0x40] sm:$0xff]  ;;  %v83_v48 = vld [vmem:[#allocation5 + $0x48] sm:$0xff]  ;;  %v1800_v50 = vcombine.low %v90_v38, %v94_v39  ;;  %v1802_v51 = vcombine.low %v91_v40, %v95_v41 }
  0x41   :  { %896 = vmatpush1.bf16.msra.mxu0 %v1824_v26  ;;  %937 = vmatpush1.bf16.msra.mxu1 %v1826_v27  ;;  %v86_v47 = vld [vmem:[#allocation5 + $0x60] sm:$0xff]  ;;  %v87_v49 = vld [vmem:[#allocation5 + $0x68] sm:$0xff] }
  0x42   :  { %897 = vmatprep.subr.bf16.mxu0 %v1817_v28  ;;  %938 = vmatprep.subr.bf16.mxu1 %v1819_v29  ;;  %v1793_v52 = vcombine.high %v82_v46, %v86_v47  ;;  %v1795_v54 = vcombine.high %v83_v48, %v87_v49  ;;  %v74_v55 = vld [vmem:[#allocation5] sm:$0xff]  ;;  %v75_v58 = vld [vmem:[#allocation5 + $0x8] sm:$0xff]  ;;  %v1792_v60 = vcombine.low %v82_v46, %v86_v47 }
  0x43   :  { %v78_v56 = vld [vmem:[#allocation5 + $0x20] sm:$0xff]  ;;  %v79_v59 = vld [vmem:[#allocation5 + $0x28] sm:$0xff]  ;;  %v1794_v61 = vcombine.low %v83_v48, %v87_v49 }
  0x44   :  { %v1785_v62 = vcombine.high %v74_v55, %v78_v56  ;;  %v1787_v63 = vcombine.high %v75_v58, %v79_v59  ;;  %v194_v0 = vld [vmem:[#allocation5 + $0x3c0] sm:$0xff]  ;;  %v195_v2 = vld [vmem:[#allocation5 + $0x3c8] sm:$0xff]  ;;  %v1784_v4 = vcombine.low %v74_v55, %v78_v56  ;;  %v1786_v5 = vcombine.low %v75_v58, %v79_v59 }
  0x45   :  { %898 = vmatpush1.bf16.msra.mxu0 %v1816_v34  ;;  %939 = vmatpush1.bf16.msra.mxu1 %v1818_v35  ;;  %v198_v1 = vld [vmem:[#allocation5 + $0x3e0] sm:$0xff]  ;;  %v199_v3 = vld [vmem:[#allocation5 + $0x3e8] sm:$0xff] }
  0x46   :  { %899 = vmatprep.subr.bf16.mxu0 %v1809_v36  ;;  %940 = vmatprep.subr.bf16.mxu1 %v1811_v37  ;;  %v1905_v6 = vcombine.high %v194_v0, %v198_v1  ;;  %v1907_v7 = vcombine.high %v195_v2, %v199_v3  ;;  %v186_v8 = vld [vmem:[#allocation5 + $0x380] sm:$0xff]  ;;  %v187_v10 = vld [vmem:[#allocation5 + $0x388] sm:$0xff]  ;;  %v1904_v12 = vcombine.low %v194_v0, %v198_v1 }
  0x47   :  { %v190_v9 = vld [vmem:[#allocation5 + $0x3a0] sm:$0xff]  ;;  %v191_v11 = vld [vmem:[#allocation5 + $0x3a8] sm:$0xff]  ;;  %v1906_v13 = vcombine.low %v195_v2, %v199_v3  ;;  %v136_v2 = vld [vmem:[#allocation5 + $0x1f0] sm:$0xff] }
  0x48   :  { %v1897_v14 = vcombine.high %v186_v8, %v190_v9  ;;  %v1899_v15 = vcombine.high %v187_v10, %v191_v11  ;;  %v178_v16 = vld [vmem:[#allocation5 + $0x340] sm:$0xff]  ;;  %v179_v18 = vld [vmem:[#allocation5 + $0x348] sm:$0xff]  ;;  %v1896_v20 = vcombine.low %v186_v8, %v190_v9  ;;  %v1898_v21 = vcombine.low %v187_v10, %v191_v11  ;;  %v128_v10 = vld [vmem:[#allocation5 + $0x1b0] sm:$0xff] }
  0x49   :  { %900 = vmatpush1.bf16.msra.mxu0 %v1808_v42  ;;  %941 = vmatpush1.bf16.msra.mxu1 %v1810_v43  ;;  %v182_v17 = vld [vmem:[#allocation5 + $0x360] sm:$0xff]  ;;  %v183_v19 = vld [vmem:[#allocation5 + $0x368] sm:$0xff] }
  0x4a   :  { %901 = vmatprep.subr.bf16.mxu0 %v1801_v44  ;;  %942 = vmatprep.subr.bf16.mxu1 %v1803_v45  ;;  %v1889_v22 = vcombine.high %v178_v16, %v182_v17  ;;  %v1891_v23 = vcombine.high %v179_v18, %v183_v19  ;;  %v170_v24 = vld [vmem:[#allocation5 + $0x300] sm:$0xff]  ;;  %v171_v26 = vld [vmem:[#allocation5 + $0x308] sm:$0xff]  ;;  %v1888_v28 = vcombine.low %v178_v16, %v182_v17  ;;  %v116_v16 = vld [vmem:[#allocation5 + $0x150] sm:$0xff] }
  0x4b   :  { %v174_v25 = vld [vmem:[#allocation5 + $0x320] sm:$0xff]  ;;  %v175_v27 = vld [vmem:[#allocation5 + $0x328] sm:$0xff]  ;;  %v1890_v29 = vcombine.low %v179_v18, %v183_v19  ;;  %v120_v19 = vld [vmem:[#allocation5 + $0x170] sm:$0xff] }
  0x4c   :  { %v1881_v30 = vcombine.high %v170_v24, %v174_v25  ;;  %v1883_v31 = vcombine.high %v171_v26, %v175_v27  ;;  %v162_v32 = vld [vmem:[#allocation5 + $0x2c0] sm:$0xff]  ;;  %v163_v34 = vld [vmem:[#allocation5 + $0x2c8] sm:$0xff]  ;;  %v1880_v36 = vcombine.low %v170_v24, %v174_v25  ;;  %v1882_v38 = vcombine.low %v171_v26, %v175_v27  ;;  %v112_v24 = vld [vmem:[#allocation5 + $0x130] sm:$0xff] }
  0x4d   :  { %902 = vmatpush1.bf16.msra.mxu0 %v1800_v50  ;;  %943 = vmatpush1.bf16.msra.mxu1 %v1802_v51  ;;  %v166_v33 = vld [vmem:[#allocation5 + $0x2e0] sm:$0xff]  ;;  %v167_v35 = vld [vmem:[#allocation5 + $0x2e8] sm:$0xff]  ;;  %v1829_v26 = vcombine.high %v116_v16, %v120_v19  ;;  %v109_v27 = vld [vmem:[#allocation5 + $0x118] sm:$0xff] }
  0x4e   :  { %903 = vmatprep.subr.bf16.mxu0 %v1793_v52  ;;  %944 = vmatprep.subr.bf16.mxu1 %v1795_v54  ;;  %v154_v37 = vld [vmem:[#allocation5 + $0x280] sm:$0xff]  ;;  %v1873_v39 = vcombine.high %v162_v32, %v166_v33  ;;  %v1875_v41 = vcombine.high %v163_v34, %v167_v35  ;;  %v155_v42 = vld [vmem:[#allocation5 + $0x288] sm:$0xff]  ;;  %v1872_v44 = vcombine.low %v162_v32, %v166_v33  ;;  %v104_v32 = vld [vmem:[#allocation5 + $0xf0] sm:$0xff] }
  0x4f   :  { %v158_v40 = vld [vmem:[#allocation5 + $0x2a0] sm:$0xff]  ;;  %v159_v43 = vld [vmem:[#allocation5 + $0x2a8] sm:$0xff]  ;;  %v1874_v46 = vcombine.low %v163_v34, %v167_v35  ;;  %v101_v35 = vld [vmem:[#allocation5 + $0xd8] sm:$0xff] }
  0x50   :  { %v146_v45 = vld [vmem:[#allocation5 + $0x240] sm:$0xff]  ;;  %v1865_v47 = vcombine.high %v154_v37, %v158_v40  ;;  %v1867_v49 = vcombine.high %v155_v42, %v159_v43  ;;  %v147_v50 = vld [vmem:[#allocation5 + $0x248] sm:$0xff]  ;;  %v1864_v52 = vcombine.low %v154_v37, %v158_v40  ;;  %v1866_v55 = vcombine.low %v155_v42, %v159_v43  ;;  %v96_v40 = vld [vmem:[#allocation5 + $0xb0] sm:$0xff] }
  0x51   :  { %904 = vmatpush1.bf16.msra.mxu0 %v1792_v60  ;;  %945 = vmatpush1.bf16.msra.mxu1 %v1794_v61  ;;  %v150_v48 = vld [vmem:[#allocation5 + $0x260] sm:$0xff]  ;;  %v151_v51 = vld [vmem:[#allocation5 + $0x268] sm:$0xff]  ;;  %v93_v42 = vld [vmem:[#allocation5 + $0x98] sm:$0xff] }
  0x52   :  { %905 = vmatprep.subr.bf16.mxu0 %v1785_v62  ;;  %946 = vmatprep.subr.bf16.mxu1 %v1787_v63  ;;  %v138_v54 = vld [vmem:[#allocation5 + $0x200] sm:$0xff]  ;;  %v1857_v56 = vcombine.high %v146_v45, %v150_v48  ;;  %v1859_v59 = vcombine.high %v147_v50, %v151_v51  ;;  %v139_v60 = vld [vmem:[#allocation5 + $0x208] sm:$0xff]  ;;  %v1856_v62 = vcombine.low %v146_v45, %v150_v48  ;;  %v132_v63 = vld [vmem:[#allocation5 + $0x1d0] sm:$0xff] }
  0x53   :  { %v142_v58 = vld [vmem:[#allocation5 + $0x220] sm:$0xff]  ;;  %v143_v61 = vld [vmem:[#allocation5 + $0x228] sm:$0xff]  ;;  %v1858_v0 = vcombine.low %v147_v50, %v151_v51  ;;  %v1845_v9 = vcombine.high %v132_v63, %v136_v2  ;;  %v97_v43 = vld [vmem:[#allocation5 + $0xb8] sm:$0xff] }
  0x54   :  { %v1849_v1 = vcombine.high %v138_v54, %v142_v58  ;;  %v1851_v3 = vcombine.high %v139_v60, %v143_v61  ;;  %v1850_v8 = vcombine.low %v139_v60, %v143_v61  ;;  %v85_v50 = vld [vmem:[#allocation5 + $0x58] sm:$0xff] }
  0x55   :  { %906 = vmatpush1.bf16.msra.mxu0 %v1784_v4  ;;  %947 = vmatpush1.bf16.msra.mxu1 %v1786_v5  ;;  %v133_v4 = vld [vmem:[#allocation5 + $0x1d8] sm:$0xff] }
  0x56   :  { %907 = vmatprep.subr.bf16.mxu0 %v1905_v6  ;;  %948 = vmatprep.subr.bf16.mxu1 %v1907_v7  ;;  %v137_v5 = vld [vmem:[#allocation5 + $0x1f8] sm:$0xff]  ;;  %v1848_v6 = vcombine.low %v138_v54, %v142_v58  ;;  %v124_v7 = vld [vmem:[#allocation5 + $0x190] sm:$0xff]  ;;  %v1806_v58 = vcombine.low %v93_v42, %v97_v43 }
  0x57   :  { %v1847_v11 = vcombine.high %v133_v4, %v137_v5  ;;  %v1846_v17 = vcombine.low %v133_v4, %v137_v5  ;;  %v1837_v18 = vcombine.high %v124_v7, %v128_v10  ;;  %v89_v51 = vld [vmem:[#allocation5 + $0x78] sm:$0xff] }
  0x58   :  { %v77_v60 = vld [vmem:[#allocation5 + $0x18] sm:$0xff] }
  0x59   :  { %908 = vmatpush2.bf16.msra.mxu0 %v1904_v12  ;;  %949 = vmatpush2.bf16.msra.mxu1 %v1906_v13  ;;  %v125_v12 = vld [vmem:[#allocation5 + $0x198] sm:$0xff]  ;;  %v2313_v13 = vcombine.low %v2303_v53, %v2303_v53  ;;  %v1836_v53 = vcombine.low %v124_v7, %v128_v10 }
  0x5a   :  { %909 = vmatprep.subr.bf16.mxu0 %v1897_v14  ;;  %950 = vmatprep.subr.bf16.mxu1 %v1899_v15  ;;  %v129_v14 = vld [vmem:[#allocation5 + $0x1b8] sm:$0xff]  ;;  %v1844_v15 = vcombine.low %v132_v63, %v136_v2  ;;  %v1798_v2 = vcombine.low %v85_v50, %v89_v51 }
  0x5b   :  { %v1838_v25 = vcombine.low %v125_v12, %v129_v14  ;;  %v81_v61 = vld [vmem:[#allocation5 + $0x38] sm:$0xff] }
  0x5c   :  { %v197_v4 = vld [vmem:[#allocation5 + $0x3d8] sm:$0xff] }
  0x5d   :  { %910 = vmatpush2.bf16.msra.mxu0 %v1896_v20  ;;  %951 = vmatpush2.bf16.msra.mxu1 %v1898_v21  ;;  %v1839_v20 = vcombine.high %v125_v12, %v129_v14  ;;  %v117_v21 = vld [vmem:[#allocation5 + $0x158] sm:$0xff]  ;;  %v192_v12 = vld [vmem:[#allocation5 + $0x3b0] sm:$0xff] }
  0x5e   :  { %911 = vmatprep.subr.bf16.mxu0 %v1889_v22  ;;  %952 = vmatprep.subr.bf16.mxu1 %v1891_v23  ;;  %v121_v22 = vld [vmem:[#allocation5 + $0x178] sm:$0xff]  ;;  %v108_v23 = vld [vmem:[#allocation5 + $0x110] sm:$0xff] }
  0x5f   :  { %v1830_v33 = vcombine.low %v117_v21, %v121_v22  ;;  %v1821_v34 = vcombine.high %v108_v23, %v112_v24  ;;  %v201_v5 = vld [vmem:[#allocation5 + $0x3f8] sm:$0xff] }
  0x60   :  { %v1911_v10 = vcombine.high %v197_v4, %v201_v5  ;;  %v189_v14 = vld [vmem:[#allocation5 + $0x398] sm:$0xff] }
  0x61   :  { %912 = vmatpush2.bf16.msra.mxu0 %v1888_v28  ;;  %953 = vmatpush2.bf16.msra.mxu1 %v1890_v29  ;;  %v113_v28 = vld [vmem:[#allocation5 + $0x138] sm:$0xff]  ;;  %v1831_v29 = vcombine.high %v117_v21, %v121_v22  ;;  %v184_v21 = vld [vmem:[#allocation5 + $0x370] sm:$0xff] }
  0x62   :  { %913 = vmatprep.subr.bf16.mxu0 %v1881_v30  ;;  %954 = vmatprep.subr.bf16.mxu1 %v1883_v31  ;;  %v1828_v30 = vcombine.low %v116_v16, %v120_v19  ;;  %v100_v31 = vld [vmem:[#allocation5 + $0xd0] sm:$0xff]  ;;  %v1823_v37 = vcombine.high %v109_v27, %v113_v28  ;;  %v181_v22 = vld [vmem:[#allocation5 + $0x358] sm:$0xff] }
  0x63   :  { %v1812_v45 = vcombine.low %v100_v31, %v104_v32 }
  0x65   :  { %914 = vmatpush2.bf16.msra.mxu0 %v1880_v36  ;;  %955 = vmatpush2.bf16.msra.mxu1 %v1882_v38  ;;  %v105_v36 = vld [vmem:[#allocation5 + $0xf8] sm:$0xff]  ;;  %v1820_v38 = vcombine.low %v108_v23, %v112_v24 }
  0x66   :  { %915 = vmatprep.subr.bf16.mxu0 %v1873_v39  ;;  %956 = vmatprep.subr.bf16.mxu1 %v1875_v41  ;;  %v92_v39 = vld [vmem:[#allocation5 + $0x90] sm:$0xff]  ;;  %v1822_v41 = vcombine.low %v109_v27, %v113_v28  ;;  %v1814_v48 = vcombine.low %v101_v35, %v105_v36 }
  0x67   :  { %v1804_v54 = vcombine.low %v92_v39, %v96_v40  ;;  %v172_v27 = vld [vmem:[#allocation5 + $0x310] sm:$0xff] }
  0x68   :  { %v176_v28 = vld [vmem:[#allocation5 + $0x330] sm:$0xff] }
  0x69   :  { %916 = vmatpush2.bf16.msra.mxu0 %v1872_v44  ;;  %957 = vmatpush2.bf16.msra.mxu1 %v1874_v46  ;;  %v1815_v44 = vcombine.high %v101_v35, %v105_v36  ;;  %v84_v46 = vld [vmem:[#allocation5 + $0x50] sm:$0xff] }
  0x6a   :  { %917 = vmatprep.subr.bf16.mxu0 %v1865_v47  ;;  %958 = vmatprep.subr.bf16.mxu1 %v1867_v49  ;;  %v88_v47 = vld [vmem:[#allocation5 + $0x70] sm:$0xff]  ;;  %v1805_v49 = vcombine.high %v92_v39, %v96_v40  ;;  %v1884_v39 = vcombine.low %v172_v27, %v176_v28 }
  0x6b   :  { %v1796_v63 = vcombine.low %v84_v46, %v88_v47  ;;  %v164_v35 = vld [vmem:[#allocation5 + $0x2d0] sm:$0xff] }
  0x6c   :  { %v168_v36 = vld [vmem:[#allocation5 + $0x2f0] sm:$0xff] }
  0x6d   :  { %918 = vmatpush2.bf16.msra.mxu0 %v1864_v52  ;;  %959 = vmatpush2.bf16.msra.mxu1 %v1866_v55  ;;  %v1807_v52 = vcombine.high %v93_v42, %v97_v43  ;;  %v76_v55 = vld [vmem:[#allocation5 + $0x10] sm:$0xff] }
  0x6e   :  { %919 = vmatprep.subr.bf16.mxu0 %v1857_v56  ;;  %960 = vmatprep.subr.bf16.mxu1 %v1859_v59  ;;  %v80_v56 = vld [vmem:[#allocation5 + $0x30] sm:$0xff]  ;;  %v1797_v59 = vcombine.high %v84_v46, %v88_v47  ;;  %v1876_v46 = vcombine.low %v164_v35, %v168_v36 }
  0x6f   :  { %v1788_v7 = vcombine.low %v76_v55, %v80_v56  ;;  %v156_v42 = vld [vmem:[#allocation5 + $0x290] sm:$0xff] }
  0x70   :  { %v160_v43 = vld [vmem:[#allocation5 + $0x2b0] sm:$0xff] }
  0x71   :  { %920 = vmatpush2.bf16.msra.mxu0 %v1856_v62  ;;  %961 = vmatpush2.bf16.msra.mxu1 %v1858_v0  ;;  %v1799_v62 = vcombine.high %v85_v50, %v89_v51  ;;  %v196_v0 = vld [vmem:[#allocation5 + $0x3d0] sm:$0xff] }
  0x72   :  { %921 = vmatprep.subr.bf16.mxu0 %v1849_v1  ;;  %962 = vmatprep.subr.bf16.mxu1 %v1851_v3  ;;  %v200_v1 = vld [vmem:[#allocation5 + $0x3f0] sm:$0xff]  ;;  %v1789_v3 = vcombine.high %v76_v55, %v80_v56  ;;  %v1868_v55 = vcombine.low %v156_v42, %v160_v43 }
  0x73   :  { %v1908_v16 = vcombine.low %v196_v0, %v200_v1  ;;  %v148_v50 = vld [vmem:[#allocation5 + $0x250] sm:$0xff] }
  0x74   :  { %v152_v51 = vld [vmem:[#allocation5 + $0x270] sm:$0xff] }
  0x75   :  { %922 = vmatpush2.bf16.msra.mxu0 %v1848_v6  ;;  %963 = vmatpush2.bf16.msra.mxu1 %v1850_v8  ;;  %v1791_v6 = vcombine.high %v77_v60, %v81_v61  ;;  %v1790_v8 = vcombine.low %v77_v60, %v81_v61  ;;  %v140_v60 = vld [vmem:[#allocation5 + $0x210] sm:$0xff] }
  0x76   :  { %973 = vmatprep.subr.bf16.mxu0 %v1845_v9  ;;  %1014 = vmatprep.subr.bf16.mxu1 %v1847_v11  ;;  %v1909_v9 = vcombine.high %v196_v0, %v200_v1  ;;  %v188_v11 = vld [vmem:[#allocation5 + $0x390] sm:$0xff]  ;;  %v1860_v0 = vcombine.low %v148_v50, %v152_v51 }
  0x77   :  { %v1900_v23 = vcombine.low %v188_v11, %v192_v12  ;;  %v144_v61 = vld [vmem:[#allocation5 + $0x230] sm:$0xff] }
  0x78   :  { %924 = vmatmul.mubr.bf16.vlgmr.msra.gmra.mxu0 %v2313_v13  ;;  %965 = vmatmul.mubr.bf16.vlgmr.msra.gmra.mxu1 %v2313_v13 }
  0x79   :  { %974 = vmatpush1.bf16.msra.mxu0 %v1844_v15  ;;  %1015 = vmatpush1.bf16.msra.mxu1 %v1846_v17  ;;  %v193_v15 = vld [vmem:[#allocation5 + $0x3b8] sm:$0xff]  ;;  %v1910_v17 = vcombine.low %v197_v4, %v201_v5  ;;  %v1852_v4 = vcombine.low %v140_v60, %v144_v61 }
  0x7a   :  { %975 = vmatprep.subr.bf16.mxu0 %v1837_v18  ;;  %1016 = vmatprep.subr.bf16.mxu1 %v1839_v20  ;;  %v1901_v18 = vcombine.high %v188_v11, %v192_v12  ;;  %v1903_v19 = vcombine.high %v189_v14, %v193_v15  ;;  %v180_v20 = vld [vmem:[#allocation5 + $0x350] sm:$0xff]  ;;  %v1902_v24 = vcombine.low %v189_v14, %v193_v15  ;;  %v2081_v11 = vld [vmem:[#allocation8 + $0xf0] sm:$0xff]  }
  0x7b   :  { %1005 = vmatprep.mubr.bf16.mxu0 %v2307_v57  ;;  %1046 = vmatprep.mubr.bf16.mxu1 %v2307_v57  ;;  %v1813_v57 = vcombine.high %v100_v31, %v104_v32  ;;  %v1892_v31 = vcombine.low %v180_v20, %v184_v21  ;;  %v2082_v12 = vld [vmem:[#allocation8 + $0x30] sm:$0xff]   ;;  %v2084_v15 = vld [vmem:[#allocation8 + $0x68] sm:$0xff]  }
  0x7c   :  { %v2083_v14 = vld [vmem:[#allocation8 + $0xb0] sm:$0xff]  }
  0x7d   :  { %976 = vmatpush1.bf16.msra.mxu0 %v1836_v53  ;;  %1017 = vmatpush1.bf16.msra.mxu1 %v1838_v25  ;;  %v185_v53 = vld [vmem:[#allocation5 + $0x378] sm:$0xff]  ;;  %v1893_v25 = vcombine.high %v180_v20, %v184_v21  ;;  %v2089_v20 = vld [vmem:[#allocation8 + $0xe0] sm:$0xff]  }
  0x7e   :  { %977 = vmatprep.subr.bf16.mxu0 %v1829_v26  ;;  %1018 = vmatprep.subr.bf16.mxu1 %v1831_v29  ;;  %v1895_v26 = vcombine.high %v181_v22, %v185_v53  ;;  %v173_v29 = vld [vmem:[#allocation5 + $0x318] sm:$0xff]  ;;  %v1894_v32 = vcombine.low %v181_v22, %v185_v53  ;;  %v2090_v21 = vld [vmem:[#allocation8 + $0x20] sm:$0xff]   ;;  %v2092_v22 = vld [vmem:[#allocation8 + $0x58] sm:$0xff]  }
  0x7f   :  { %v2093_v53 = vld [vmem:[#allocation8 + $0xd8] sm:$0xff]  }
  0x81   :  { %978 = vmatpush1.bf16.msra.mxu0 %v1828_v30  ;;  %1019 = vmatpush1.bf16.msra.mxu1 %v1830_v33  ;;  %v177_v30 = vld [vmem:[#allocation5 + $0x338] sm:$0xff]  ;;  %v1885_v33 = vcombine.high %v172_v27, %v176_v28 }
  0x82   :  { %979 = vmatprep.subr.bf16.mxu0 %v1821_v34  ;;  %1020 = vmatprep.subr.bf16.mxu1 %v1823_v37  ;;  %v1887_v34 = vcombine.high %v173_v29, %v177_v30  ;;  %v165_v37 = vld [vmem:[#allocation5 + $0x2d8] sm:$0xff]  ;;  %v1886_v40 = vcombine.low %v173_v29, %v177_v30  ;;  %v2100_v29 = vld [vmem:[#allocation8 + $0x48] sm:$0xff]  }
  0x83   :  { %v2098_v27 = vld [vmem:[#allocation8 + $0x10] sm:$0xff]   ;;  %v2101_v30 = vld [vmem:[#allocation8 + $0xc8] sm:$0xff]  }
  0x84   :  { %v2099_v28 = vld [vmem:[#allocation8 + $0x90] sm:$0xff]  }
  0x85   :  { %980 = vmatpush1.bf16.msra.mxu0 %v1820_v38  ;;  %1021 = vmatpush1.bf16.msra.mxu1 %v1822_v41  ;;  %v169_v38 = vld [vmem:[#allocation5 + $0x2f8] sm:$0xff]  ;;  %v1877_v41 = vcombine.high %v164_v35, %v168_v36  ;;  %v2106_v35 = vld [vmem:[#allocation8] sm:$0xff]  }
  0x86   :  { %981 = vmatprep.subr.bf16.mxu0 %v1813_v57  ;;  %1022 = vmatprep.subr.bf16.mxu1 %v1815_v44  ;;  %v1879_v57 = vcombine.high %v165_v37, %v169_v38  ;;  %v157_v44 = vld [vmem:[#allocation5 + $0x298] sm:$0xff]  ;;  %v1878_v47 = vcombine.low %v165_v37, %v169_v38  ;;  %v2107_v36 = vld [vmem:[#allocation8 + $0x80] sm:$0xff]   ;;  %v2108_v37 = vld [vmem:[#allocation8 + $0x178] sm:$0xff]  }
  0x87   :  { %v2109_v38 = vld [vmem:[#allocation8 + $0x1f8] sm:$0xff]  }
  0x89   :  { %982 = vmatpush1.bf16.msra.mxu0 %v1812_v45  ;;  %1023 = vmatpush1.bf16.msra.mxu1 %v1814_v48  ;;  %v161_v45 = vld [vmem:[#allocation5 + $0x2b8] sm:$0xff]  ;;  %v1869_v48 = vcombine.high %v156_v42, %v160_v43 }
  0x8a   :  { %983 = vmatprep.subr.bf16.mxu0 %v1805_v49  ;;  %1024 = vmatprep.subr.bf16.mxu1 %v1807_v52  ;;  %v1871_v49 = vcombine.high %v157_v44, %v161_v45  ;;  %v149_v52 = vld [vmem:[#allocation5 + $0x258] sm:$0xff]  ;;  %v1870_v56 = vcombine.low %v157_v44, %v161_v45 }
  0x8d   :  { %984 = vmatpush1.bf16.msra.mxu0 %v1804_v54  ;;  %1025 = vmatpush1.bf16.msra.mxu1 %v1806_v58  ;;  %v153_v54 = vld [vmem:[#allocation5 + $0x278] sm:$0xff]  ;;  %v1861_v58 = vcombine.high %v148_v50, %v152_v51 }
  0x8e   :  { %985 = vmatprep.subr.bf16.mxu0 %v1797_v59  ;;  %1026 = vmatprep.subr.bf16.mxu1 %v1799_v62  ;;  %v1863_v59 = vcombine.high %v149_v52, %v153_v54  ;;  %v141_v62 = vld [vmem:[#allocation5 + $0x218] sm:$0xff]  ;;  %v1862_v1 = vcombine.low %v149_v52, %v153_v54 }
  0x91   :  { %986 = vmatpush1.bf16.msra.mxu0 %v1796_v63  ;;  %1027 = vmatpush1.bf16.msra.mxu1 %v1798_v2  ;;  %v145_v63 = vld [vmem:[#allocation5 + $0x238] sm:$0xff]  ;;  %v1853_v2 = vcombine.high %v140_v60, %v144_v61 }
  0x92   :  { %987 = vmatprep.subr.bf16.mxu0 %v1789_v3  ;;  %1028 = vmatprep.subr.bf16.mxu1 %v1791_v6  ;;  %v1855_v3 = vcombine.high %v141_v62, %v145_v63  ;;  %v1854_v5 = vcombine.low %v141_v62, %v145_v63  ;;  %v2076_v6 = vld [vmem:[#allocation8 + $0x78] sm:$0xff]  }
  0x95   :  { %988 = vmatpush1.bf16.msra.mxu0 %v1788_v7  ;;  %1029 = vmatpush1.bf16.msra.mxu1 %v1790_v8  ;;  %v2077_v7 = vld [vmem:[#allocation8 + $0xf8] sm:$0xff]  }
  0x96   :  { %989 = vmatprep.subr.bf16.mxu0 %v1909_v9  ;;  %1030 = vmatprep.subr.bf16.mxu1 %v1911_v10  ;;  %v2078_v8 = vld [vmem:[#allocation8 + $0x38] sm:$0xff]   ;;  %v2080_v10 = vld [vmem:[#allocation8 + $0x70] sm:$0xff]  }
  0x97   :  { %v2079_v9 = vld [vmem:[#allocation8 + $0xb8] sm:$0xff]  }
  0x99   :  { %990 = vmatpush2.bf16.msra.mxu0 %v1908_v16  ;;  %1031 = vmatpush2.bf16.msra.mxu1 %v1910_v17  ;;  %v2085_v16 = vld [vmem:[#allocation8 + $0xe8] sm:$0xff]  }
  0x9a   :  { %991 = vmatprep.subr.bf16.mxu0 %v1901_v18  ;;  %1032 = vmatprep.subr.bf16.mxu1 %v1903_v19  ;;  %v2086_v17 = vld [vmem:[#allocation8 + $0x28] sm:$0xff]   ;;  %v2088_v19 = vld [vmem:[#allocation8 + $0x60] sm:$0xff]  }
  0x9b   :  { %v2087_v18 = vld [vmem:[#allocation8 + $0xa8] sm:$0xff]  }
  0x9d   :  { %992 = vmatpush2.bf16.msra.mxu0 %v1900_v23  ;;  %1033 = vmatpush2.bf16.msra.mxu1 %v1902_v24  ;;  %v2094_v23 = vld [vmem:[#allocation8 + $0x18] sm:$0xff]  }
  0x9e   :  { %993 = vmatprep.subr.bf16.mxu0 %v1893_v25  ;;  %1034 = vmatprep.subr.bf16.mxu1 %v1895_v26  ;;  %v2095_v24 = vld [vmem:[#allocation8 + $0x98] sm:$0xff]   ;;  %v2096_v25 = vld [vmem:[#allocation8 + $0x50] sm:$0xff]  }
  0x9f   :  { %v2097_v26 = vld [vmem:[#allocation8 + $0xd0] sm:$0xff]  }
  0xa1   :  { %994 = vmatpush2.bf16.msra.mxu0 %v1892_v31  ;;  %1035 = vmatpush2.bf16.msra.mxu1 %v1894_v32  ;;  %v2102_v31 = vld [vmem:[#allocation8 + $0x8] sm:$0xff]  }
  0xa2   :  { %995 = vmatprep.subr.bf16.mxu0 %v1885_v33  ;;  %1036 = vmatprep.subr.bf16.mxu1 %v1887_v34  ;;  %v2103_v32 = vld [vmem:[#allocation8 + $0x88] sm:$0xff]   ;;  %v2104_v33 = vld [vmem:[#allocation8 + $0x40] sm:$0xff]  }
  0xa3   :  { %v2105_v34 = vld [vmem:[#allocation8 + $0xc0] sm:$0xff]  }
  0xa5   :  { %996 = vmatpush2.bf16.msra.mxu0 %v1884_v39  ;;  %1037 = vmatpush2.bf16.msra.mxu1 %v1886_v40  ;;  %v204_v39 = vlaneseq }
  0xa6   :  { %997 = vmatprep.subr.bf16.mxu0 %v1877_v41  ;;  %1038 = vmatprep.subr.bf16.mxu1 %v1879_v57  ;;  %v2325_v57 = vld [vmem:[#allocation7] sm:$0xff] }
  0xa7   :  { %v2322_v40 = vshrl.u32 %v204_v39, 7 }
  0xa9   :  { %998 = vmatpush2.bf16.msra.mxu0 %v1876_v46  ;;  %1039 = vmatpush2.bf16.msra.mxu1 %v1878_v47  ;;  %v206_v41 = vsub.s32 0, %v2322_v40  ;;  %v214_v42 = vsub.s32 2, %v2322_v40  ;;  %v210_v43 = vsub.s32 1, %v2322_v40  ;;  %v218_v44 = vsub.s32 3, %v2322_v40 }
  0xaa   :  { %999 = vmatprep.subr.bf16.mxu0 %v1869_v48  ;;  %1040 = vmatprep.subr.bf16.mxu1 %v1871_v49 }
  0xab   :  { %v207_v45 = vrot.slane %v2325_v57, %v206_v41  ;;  %v215_v46 = vrot.slane %v2325_v57, %v214_v42  ;;  %v211_v47 = vrot.slane %v2325_v57, %v210_v43  ;;  %v219_v49 = vrot.slane %v2325_v57, %v218_v44 }
  0xac   :  { %v234_v41 = vsub.s32 7, %v2322_v40 }
  0xad   :  { %1000 = vmatpush2.bf16.msra.mxu0 %v1868_v55  ;;  %1041 = vmatpush2.bf16.msra.mxu1 %v1870_v56 }
  0xae   :  { %1001 = vmatprep.subr.bf16.mxu0 %v1861_v58  ;;  %1042 = vmatprep.subr.bf16.mxu1 %v1863_v59 }
  0xb1   :  { %1002 = vmatpush2.bf16.msra.mxu0 %v1860_v0  ;;  %1043 = vmatpush2.bf16.msra.mxu1 %v1862_v1 }
  0xb2   :  { %1003 = vmatprep.subr.bf16.mxu0 %v1853_v2  ;;  %1044 = vmatprep.subr.bf16.mxu1 %v1855_v3 }
  0xb5   :  { %1004 = vmatpush2.bf16.msra.mxu0 %v1852_v4  ;;  %1045 = vmatpush2.bf16.msra.mxu1 %v1854_v5  ;;  %v2110_v5 = vld [vmem:[#allocation8 + $0x138] sm:$0xff]  }
  0xb6   :  { %1977 = vmatprep.subr.bf16.mxu0 %v2076_v6  ;;  %1999 = vmatprep.subr.bf16.mxu1 %v2077_v7 }
  0xb8   :  { %1006 = vmatmul.mubr.bf16.vlgmr.msra.gmra.mxu0 %v2313_v13  ;;  %1047 = vmatmul.mubr.bf16.vlgmr.msra.gmra.mxu1 %v2313_v13  ;;  %v2091_v13 = vld [vmem:[#allocation8 + $0xa0] sm:$0xff]  }
  0xb9   :  { %1978 = vmatpush3.bf16.msra.mxu0 %v2078_v8  ;;  %2000 = vmatpush3.bf16.msra.mxu1 %v2079_v9  ;;  %v2111_v8 = vld [vmem:[#allocation8 + $0x1b8] sm:$0xff]   ;;  %v2112_v9 = vld [vmem:[#allocation8 + $0x170] sm:$0xff]  }
  0xba   :  { %1979 = vmatprep.subr.bf16.mxu0 %v2080_v10  ;;  %2001 = vmatprep.subr.bf16.mxu1 %v2081_v11  ;;  %v2113_v10 = vld [vmem:[#allocation8 + $0x1f0] sm:$0xff]  }
  0xbb   :  { %v2114_v11 = vld [vmem:[#allocation8 + $0x130] sm:$0xff]  }
  0xbd   :  { %1980 = vmatpush3.bf16.msra.mxu0 %v2082_v12  ;;  %2002 = vmatpush3.bf16.msra.mxu1 %v2083_v14  ;;  %v2115_v12 = vld [vmem:[#allocation8 + $0x1b0] sm:$0xff]   ;;  %v2116_v14 = vld [vmem:[#allocation8 + $0x168] sm:$0xff]  }
  0xbe   :  { %1981 = vmatprep.subr.bf16.mxu0 %v2084_v15  ;;  %2003 = vmatprep.subr.bf16.mxu1 %v2085_v16  ;;  %v2117_v15 = vld [vmem:[#allocation8 + $0x1e8] sm:$0xff]  }
  0xbf   :  { %v2118_v16 = vld [vmem:[#allocation8 + $0x128] sm:$0xff]  }
  0xc1   :  { %1982 = vmatpush3.bf16.msra.mxu0 %v2086_v17  ;;  %2004 = vmatpush3.bf16.msra.mxu1 %v2087_v18  ;;  %v2119_v17 = vld [vmem:[#allocation8 + $0x1a8] sm:$0xff]   ;;  %v2120_v18 = vld [vmem:[#allocation8 + $0x160] sm:$0xff]  }
  0xc2   :  { %1983 = vmatprep.subr.bf16.mxu0 %v2088_v19  ;;  %2005 = vmatprep.subr.bf16.mxu1 %v2089_v20  ;;  %v2121_v19 = vld [vmem:[#allocation8 + $0x1e0] sm:$0xff]  }
  0xc3   :  { %v2122_v20 = vld [vmem:[#allocation8 + $0x120] sm:$0xff]  }
  0xc5   :  { %1984 = vmatpush3.bf16.msra.mxu0 %v2090_v21  ;;  %2006 = vmatpush3.bf16.msra.mxu1 %v2091_v13  ;;  %v2123_v21 = vld [vmem:[#allocation8 + $0x1a0] sm:$0xff]   ;;  %v2124_v13 = vld [vmem:[#allocation8 + $0x158] sm:$0xff]  }
  0xc6   :  { %1985 = vmatprep.subr.bf16.mxu0 %v2092_v22  ;;  %2007 = vmatprep.subr.bf16.mxu1 %v2093_v53  ;;  %v2125_v22 = vld [vmem:[#allocation8 + $0x1d8] sm:$0xff]  }
  0xc7   :  { %v2126_v53 = vld [vmem:[#allocation8 + $0x118] sm:$0xff]  }
  0xc9   :  { %1986 = vmatpush3.bf16.msra.mxu0 %v2094_v23  ;;  %2008 = vmatpush3.bf16.msra.mxu1 %v2095_v24  ;;  %v2127_v23 = vld [vmem:[#allocation8 + $0x198] sm:$0xff]   ;;  %v2128_v24 = vld [vmem:[#allocation8 + $0x150] sm:$0xff]  }
  0xca   :  { %1987 = vmatprep.subr.bf16.mxu0 %v2096_v25  ;;  %2009 = vmatprep.subr.bf16.mxu1 %v2097_v26  ;;  %v2129_v25 = vld [vmem:[#allocation8 + $0x1d0] sm:$0xff]  }
  0xcb   :  { %v2130_v26 = vld [vmem:[#allocation8 + $0x110] sm:$0xff]  }
  0xcd   :  { %1988 = vmatpush3.bf16.msra.mxu0 %v2098_v27  ;;  %2010 = vmatpush3.bf16.msra.mxu1 %v2099_v28  ;;  %v2131_v27 = vld [vmem:[#allocation8 + $0x190] sm:$0xff]   ;;  %v2132_v28 = vld [vmem:[#allocation8 + $0x148] sm:$0xff]  }
  0xce   :  { %1989 = vmatprep.subr.bf16.mxu0 %v2100_v29  ;;  %2011 = vmatprep.subr.bf16.mxu1 %v2101_v30  ;;  %v2133_v29 = vld [vmem:[#allocation8 + $0x1c8] sm:$0xff]  }
  0xcf   :  { %v2134_v30 = vld [vmem:[#allocation8 + $0x108] sm:$0xff]  }
  0xd1   :  { %1990 = vmatpush3.bf16.msra.mxu0 %v2102_v31  ;;  %2012 = vmatpush3.bf16.msra.mxu1 %v2103_v32  ;;  %v2135_v31 = vld [vmem:[#allocation8 + $0x188] sm:$0xff]   ;;  %v2136_v32 = vld [vmem:[#allocation8 + $0x140] sm:$0xff]  }
  0xd2   :  { %1991 = vmatprep.subr.bf16.mxu0 %v2104_v33  ;;  %2013 = vmatprep.subr.bf16.mxu1 %v2105_v34  ;;  %v2137_v33 = vld [vmem:[#allocation8 + $0x1c0] sm:$0xff]  }
  0xd3   :  { %v2138_v34 = vld [vmem:[#allocation8 + $0x100] sm:$0xff]  }
  0xd5   :  { %1992 = vmatpush3.bf16.msra.mxu0 %v2106_v35  ;;  %2014 = vmatpush3.bf16.msra.mxu1 %v2107_v36  ;;  %v2139_v35 = vld [vmem:[#allocation8 + $0x180] sm:$0xff]   ;;  %v222_v36 = vsub.s32 4, %v2322_v40 }
  0xd6   :  { %2021 = vmatprep.subr.bf16.mxu0 %v2108_v37  ;;  %2043 = vmatprep.subr.bf16.mxu1 %v2109_v38  ;;  %v230_v37 = vsub.s32 6, %v2322_v40  ;;  %v226_v38 = vsub.s32 5, %v2322_v40 }
  0xd7   :  { %v223_v42 = vrot.slane %v2325_v57, %v222_v36 }
  0xd8   :  { %v231_v43 = vrot.slane %v2325_v57, %v230_v37  ;;  %v227_v44 = vrot.slane %v2325_v57, %v226_v38 }
 0x138   :  { %v925_v48 = vpop.f32.mrf.mxu0  ;;  %v966_v51 = vpop.f32.mrf.mxu1 }
 0x139   :  { %v926_v50 = vadd.f32 %v925_v48, %v207_v45  ;;  %v967_v52 = vadd.f32 %v966_v51, %v215_v46  ;;  %v235_v46 = vrot.slane %v2325_v57, %v234_v41 }
 0x13a   :  { %v927_v54 = vpop.f32.mrf.mxu0  ;;  %v968_v56 = vpop.f32.mrf.mxu1 }
 0x13b   :  { %v928_v55 = vadd.f32 %v927_v54, %v211_v47  ;;  %v1055_v58 = vmax.f32 %v926_v50, 0.0  ;;  %v1057_v59 = vmax.f32 %v967_v52, 0.0  ;;  %v969_v60 = vadd.f32 %v968_v56, %v219_v49 }
 0x13c   :  { %v929_v61 = vpop.f32.mrf.mxu0  ;;  %v970_v63 = vpop.f32.mrf.mxu1 }
 0x13d   :  { %v1056_v62 = vmax.f32 %v928_v55, 0.0  ;;  %v1058_v0 = vmax.f32 %v969_v60, 0.0  ;;  %v1065_v2 = vpack.c.bf16 %v1057_v59, %v1057_v59  ;;  %v1063_v6 = vpack.c.bf16 %v1055_v58, %v1055_v58 }
 0x13e   :  { %v930_v1 = vpop.f32.mrf.mxu0  ;;  %v971_v4 = vpop.f32.mrf.mxu1 }
 0x13f   :  { %v1064_v3 = vpack.c.bf16 %v1056_v62, %v1056_v62  ;;  %v1066_v7 = vpack.c.bf16 %v1058_v0, %v1058_v0 }
 0x141   :  { %1622 = vmatprep.mubr.bf16.mxu0 %v1064_v3  ;;  %1662 = vmatprep.mubr.bf16.mxu1 %v1066_v7 }
 0x142   :  { %1623 = vmatmul.mubr.bf16.vlgmr.msra.gmra.mxu0 %v1063_v6  ;;  %1663 = vmatmul.mubr.bf16.vlgmr.msra.gmra.mxu1 %v1065_v2 }
 0x143   :  { %2022 = vmatpush3.bf16.msra.mxu0 %v2110_v5  ;;  %2044 = vmatpush3.bf16.msra.mxu1 %v2111_v8 }
 0x144   :  { %2023 = vmatprep.subr.bf16.mxu0 %v2112_v9  ;;  %2045 = vmatprep.subr.bf16.mxu1 %v2113_v10 }
 0x147   :  { %2024 = vmatpush3.bf16.msra.mxu0 %v2114_v11  ;;  %2046 = vmatpush3.bf16.msra.mxu1 %v2115_v12  ;;  %v1912_v11 = vld [vmem:[%s2353_s4] ss:$0 sm:$0xff]  ;;  %s2260_s4 = smov [#allocation10]  }
 0x148   :  { %2025 = vmatprep.subr.bf16.mxu0 %v2116_v14  ;;  %2047 = vmatprep.subr.bf16.mxu1 %v2117_v15  ;;  %s1771_s15 = sshll.u32 %s2260_s4, 4  ;;  %s1772_s15 = int_to_ptr.vmem [resolvable:$true] %s1771_s15 }
 0x149   :  { %s2224_s16 = scalar_lea.vmem %s1772_s15, 128  ;;  %p2229_p7 = scmp.lt.s32.totalorder %s1772_s15, %s1772_s15 }
 0x14a   :  { %p2225_p6 = scmp.ne.s32.totalorder %s1772_s15, %s2224_s16  ;;  %p2230_p8 = scmp.lt.s32.totalorder %s2224_s16, %s2224_s16 }
 0x14b   :  { %2026 = vmatpush3.bf16.msra.mxu0 %v2118_v16  ;;  %2048 = vmatpush3.bf16.msra.mxu1 %v2119_v17 }
 0x14c   :  { %2027 = vmatprep.subr.bf16.mxu0 %v2120_v18  ;;  %2049 = vmatprep.subr.bf16.mxu1 %v2121_v19  ;;  %p2231_p9 = por %p2230_p8, %p2229_p7 }
 0x14e   :  { %p2232_p10 = pnand %p2231_p9, %p2225_p6 }
 0x14f   :  { %2028 = vmatpush3.bf16.msra.mxu0 %v2122_v20  ;;  %2050 = vmatpush3.bf16.msra.mxu1 %v2123_v21 }
 0x150   :  { %2029 = vmatprep.subr.bf16.mxu0 %v2124_v13  ;;  %2051 = vmatprep.subr.bf16.mxu1 %v2125_v22  ;;  %v1752_v13 = vand.u32 127, %v204_v39 }
 0x152   :  { %vm1753_vm0 = vcmp.lt.s32.totalorder %v1752_v13, 10 }
 0x153   :  { %2030 = vmatpush3.bf16.msra.mxu0 %v2126_v53  ;;  %2052 = vmatpush3.bf16.msra.mxu1 %v2127_v23 }
 0x154   :  { %2031 = vmatprep.subr.bf16.mxu0 %v2128_v24  ;;  %2053 = vmatprep.subr.bf16.mxu1 %v2129_v25 }
 0x157   :  { %2032 = vmatpush3.bf16.msra.mxu0 %v2130_v26  ;;  %2054 = vmatpush3.bf16.msra.mxu1 %v2131_v27 }
 0x158   :  { %2033 = vmatprep.subr.bf16.mxu0 %v2132_v28  ;;  %2055 = vmatprep.subr.bf16.mxu1 %v2133_v29 }
 0x15b   :  { %2034 = vmatpush3.bf16.msra.mxu0 %v2134_v30  ;;  %2056 = vmatpush3.bf16.msra.mxu1 %v2135_v31 }
 0x15c   :  { %2035 = vmatprep.subr.bf16.mxu0 %v2136_v32  ;;  %2057 = vmatprep.subr.bf16.mxu1 %v2137_v33 }
 0x15f   :  { %2036 = vmatpush3.bf16.msra.mxu0 %v2138_v34  ;;  %2058 = vmatpush3.bf16.msra.mxu1 %v2139_v35 }
 0x178   :  { %v1007_v45 = vpop.f32.mrf.mxu0  ;;  %v1048_v48 = vpop.f32.mrf.mxu1 }
 0x179   :  { %v1008_v47 = vadd.f32 %v1007_v45, %v223_v42  ;;  %v1049_v49 = vadd.f32 %v1048_v48, %v231_v43 }
 0x17a   :  { %v1009_v50 = vpop.f32.mrf.mxu0  ;;  %v1050_v52 = vpop.f32.mrf.mxu1 }
 0x17b   :  { %v1010_v51 = vadd.f32 %v1009_v50, %v227_v44  ;;  %v1059_v54 = vmax.f32 %v1008_v47, 0.0  ;;  %v1061_v55 = vmax.f32 %v1049_v49, 0.0  ;;  %v1051_v56 = vadd.f32 %v1050_v52, %v235_v46 }
 0x17c   :  { %v1011_v58 = vpop.f32.mrf.mxu0  ;;  %v1052_v59 = vpop.f32.mrf.mxu1 }
 0x17d   :  { %v1060_v40 = vmax.f32 %v1010_v51, 0.0  ;;  %v1062_v60 = vmax.f32 %v1051_v56, 0.0  ;;  %v1069_v62 = vpack.c.bf16 %v1061_v55, %v1061_v55  ;;  %v1067_v1 = vpack.c.bf16 %v1059_v54, %v1059_v54 }
 0x17e   :  { %v1012_v61 = vpop.f32.mrf.mxu0  ;;  %v1053_v0 = vpop.f32.mrf.mxu1 }
 0x17f   :  { %v1068_v63 = vpack.c.bf16 %v1060_v40, %v1060_v40  ;;  %v1070_v2 = vpack.c.bf16 %v1062_v60, %v1062_v60 }
 0x181   :  { %1702 = vmatprep.mubr.bf16.mxu0 %v1068_v63  ;;  %1742 = vmatprep.mubr.bf16.mxu1 %v1070_v2 }
 0x182   :  { %1703 = vmatmul.mubr.bf16.vlgmr.msra.gmra.mxu0 %v1067_v1  ;;  %1743 = vmatmul.mubr.bf16.vlgmr.msra.gmra.mxu1 %v1069_v62 }
 0x202   :  { %v1993_v57 = vpop.f32.mrf.mxu0  ;;  %v2015_v3 = vpop.f32.mrf.mxu1 }
 0x204   :  { %v1994_v4 = vpop.f32.mrf.mxu0  ;;  %v2016_v5 = vpop.f32.mrf.mxu1 }
 0x205   :  { %v1995_v10 = vadd.f32 %v1994_v4, %v1993_v57  ;;  %v2017_v15 = vadd.f32 %v2016_v5, %v2015_v3 }
 0x206   :  { %v1996_v6 = vpop.f32.mrf.mxu0  ;;  %v2018_v7 = vpop.f32.mrf.mxu1 }
 0x207   :  { %v1625_v12 = vadd.f32 %v1995_v10, %v1912_v11 }
 0x208   :  { %v1997_v8 = vpop.f32.mrf.mxu0  ;;  %v2019_v9 = vpop.f32.mrf.mxu1 }
 0x209   :  { %v1665_v18 = vadd.f32 %v2017_v15, %v1625_v12 }
 0x242   :  { %v2037_v14 = vpop.f32.mrf.mxu0  ;;  %v2059_v16 = vpop.f32.mrf.mxu1 }
 0x244   :  { %v2038_v17 = vpop.f32.mrf.mxu0  ;;  %v2060_v20 = vpop.f32.mrf.mxu1 }
 0x245   :  { %v2039_v19 = vadd.f32 %v2038_v17, %v2037_v14  ;;  %v2061_v53 = vadd.f32 %v2060_v20, %v2059_v16 }
 0x246   :  { %v2040_v21 = vpop.f32.mrf.mxu0  ;;  %v2062_v23 = vpop.f32.mrf.mxu1 }
 0x247   :  { %v1705_v22 = vadd.f32 %v2039_v19, %v1665_v18 }
 0x248   :  { %v2041_v24 = vpop.f32.mrf.mxu0  ;;  %v2063_v26 = vpop.f32.mrf.mxu1 }
 0x249   :  { %v1745_v25 = vadd.f32 %v2061_v53, %v1705_v22 }
 0x24b   :  { %v1750_v27 = vmax.f32 %v1745_v25, 0.0 }
 0x24d   :  { %v1754_v28 = vsel %vm1753_vm0, %v1750_v27, -inf }
 0x24e   :  { %1755 = vmax.xlane.f32.xlu0 %v1754_v28 }
 0x2d7   :  { %v1756_v29 = vpop.xlane.xlu0 %1755 }
 0x2d8   :  { %v1757_v30 = vsub.f32 %v1754_v28, %v1756_v29 }
 0x2da   :  { %v1758_v31 = vmul.f32 1.442695, %v1757_v30 }
 0x2dc   :  { %2140 = vpow2.f32 %v1758_v31 }
 0x2e9   :  { %v2141_v32 = vpop.eup %2140 }
 0x2ea   :  { %1760 = vadd.xlane.f32.xlu0 %v2141_v32 }
 0x373   :  { %v1761_v33 = vpop.xlane.xlu0 %1760 }
 0x374   :  { %2142 = vrcp.f32 %v1761_v33 }
 0x381   :  { %v2143_v39 = vpop.eup %2142 }
 0x382   :  { %v1763_v34 = vmul.f32 %v2143_v39, %v2141_v32 }
 0x384   :  { %1764 = vst [vmem:[#allocation10] sm:$0xff] %v1763_v34 }
 0x385   :  { %2235 = shalt.err (!%p2232_p10)
}
 0x386   :  { %1774 = dma.vmem_to_hbm [thread:$0]  %s1772_s15, 128, %s2354_s5, [#allocation4]  }
 0x387   :  { %2250 = dma.done.wait [#allocation4], 128  }
 0x388   :  { %2251 = vsyncadd [#allocation4], 4294967168 }
 0x389   :  { %1778 = vsyncpa [#allocation3], 1 }
 0x38a   :  { %1779 = vsyncpa [#allocation6], 1 }
 0x38b   :  { %1780 = vsyncpa [#allocation9], 1 }
 0x38c   :  { %1781 = vsyncpa [#allocation4], 1 }

</bundles_post_ra>
